<compile_context>
chip_gen: v7x
topology: tpu7x:2x2x1
jax: 0.10.0
libtpu: 0.0.40
codegen_flags: <defaults>
</compile_context>

<pallas_src>
import jax
import jax.numpy as jnp
from jax.experimental import pallas as pl
from jax.experimental.pallas import tpu as pltpu

# Small-shape config consistent with BaselineRNN(n, k, d_expand, depth, T):
N_CODE = 32                         # n
K_CODE = 16                         # k
D_EXPAND = 4
DEPTH = 2                           # RNN layers
T_STEPS = 4                         # T
B = 2

IN_SIZE = N_CODE + (N_CODE - K_CODE)    # 2n - k = 48
HIDDEN = N_CODE * D_EXPAND              # 128  (lane-dense)
PROJ_IN = HIDDEN * T_STEPS              # 512

MAX_BATCH_TILE = 128

# Packed RNN-weight buffer layout (rows; every row is HIDDEN=128 lanes wide):
#   [0, N_CODE)                                W_ih^0.T rows for |x|
#   [N_CODE, IN_SIZE)                          W_ih^0.T rows for s
#   [OFF_HH + l*H, +H)      l = 0..DEPTH-1     W_hh^l.T              (H, H)
#   [OFF_IH + (l-1)*H, +H)  l = 1..DEPTH-1     W_ih^l.T              (H, H)
#   row OFF_B + l*8                            b_ih^l + b_hh^l       (1, H)
OFF_HH = IN_SIZE
OFF_IH = OFF_HH + DEPTH * HIDDEN
OFF_B = OFF_IH + (DEPTH - 1) * HIDDEN
W_ROWS = OFF_B + DEPTH * 8                     # 448 (8-aligned sections)

PROJ_ROWS = PROJ_IN + 8                        # proj.weight.T rows + bias row


def rnn_kernel(x_ref, s_ref, w_ref, proj_ref, o_ref):
    H = HIDDEN
    x = x_ref[...]                              # (bt, n)
    s = s_ref[...]                              # (bt, n-k)
    bt = x.shape[0]

    # Layer-0 input projection is time-invariant (xs = x_.repeat(T, 1, 1)).
    # abs+concat is fused: |x| and s hit the split halves of W_ih^0.T.
    inp0 = (jnp.dot(jnp.abs(x), w_ref[0:N_CODE, :],
                    preferred_element_type=jnp.float32)
            + jnp.dot(s, w_ref[N_CODE:IN_SIZE, :],
                      preferred_element_type=jnp.float32)
            + w_ref[OFF_B:OFF_B + 1, :])        # (bt, H)

    # ---- layer 0: full T-step recurrence (only W_hh^0 per step) ----
    whh0 = w_ref[OFF_HH:OFF_HH + H, :]
    h = jnp.tanh(inp0)                          # t = 0: previous hidden is zero
    outs = [h]
    for t in range(1, T_STEPS):                 # statically unrolled, T is tiny
        h = jnp.tanh(inp0 + jnp.dot(h, whh0,
                                    preferred_element_type=jnp.float32))
        outs.append(h)

    # ---- layers 1..DEPTH-1: one batched input projection, then recurrence ----
    for l in range(1, DEPTH):
        stack = jnp.concatenate(outs, axis=0)   # (T*bt, H) sublane stack
        wih = w_ref[OFF_IH + (l - 1) * H:OFF_IH + l * H, :]
        bias = w_ref[OFF_B + l * 8:OFF_B + l * 8 + 1, :]
        pre_all = (jnp.dot(stack, wih, preferred_element_type=jnp.float32)
                   + bias)                      # (T*bt, H), single full-M dot
        whh = w_ref[OFF_HH + l * H:OFF_HH + (l + 1) * H, :]
        h = jnp.tanh(pre_all[0:bt])             # t = 0
        outs = [h]
        for t in range(1, T_STEPS):
            h = jnp.tanh(pre_all[t * bt:(t + 1) * bt]
                         + jnp.dot(h, whh, preferred_element_type=jnp.float32))
            outs.append(h)

    # ---- projection: single K = T*H dot over lane-concatenated outputs ----
    flat = jnp.concatenate(outs, axis=1)        # (bt, T*H) lane concat
    z = (jnp.dot(flat, proj_ref[0:PROJ_IN, :], preferred_element_type=jnp.float32)
         + proj_ref[PROJ_IN:PROJ_IN + 1, :])    # (bt, n)

    sgn = jnp.where(x > 0, 1.0, jnp.where(x < 0, -1.0, 0.0))
    o_ref[...] = x - sgn * z


def init_params(key):
    """PyTorch-style parameter set (native nn.RNN / nn.Linear layouts)."""
    ks = list(jax.random.split(key, 4 * DEPTH + 2))
    bound = 1.0 / (HIDDEN ** 0.5)

    def u(shape):
        return jax.random.uniform(ks.pop(), shape, jnp.float32, -bound, bound)

    p = {"w_ih": [], "w_hh": [], "b_ih": [], "b_hh": []}
    for l in range(DEPTH):
        in_dim = IN_SIZE if l == 0 else HIDDEN
        p["w_ih"].append(u((HIDDEN, in_dim)))   # weight_ih_l{l}: (H, in)
        p["w_hh"].append(u((HIDDEN, HIDDEN)))   # weight_hh_l{l}: (H, H)
        p["b_ih"].append(u((HIDDEN,)))
        p["b_hh"].append(u((HIDDEN,)))
    p["proj_w"] = u((N_CODE, PROJ_IN))          # (n, T*H)
    p["proj_b"] = u((N_CODE,))
    return p


def pack_params(p):
    """Host-side: transpose to (in, out), fuse biases, pack into 2 flat buffers."""
    w = jnp.zeros((W_ROWS, HIDDEN), jnp.float32)
    w = w.at[0:IN_SIZE].set(p["w_ih"][0].T)
    for l in range(DEPTH):
        w = w.at[OFF_HH + l * HIDDEN:OFF_HH + (l + 1) * HIDDEN].set(p["w_hh"][l].T)
    for l in range(1, DEPTH):
        w = w.at[OFF_IH + (l - 1) * HIDDEN:OFF_IH + l * HIDDEN].set(p["w_ih"][l].T)
    for l in range(DEPTH):
        w = w.at[OFF_B + l * 8].set(p["b_ih"][l] + p["b_hh"][l])

    proj = jnp.zeros((PROJ_ROWS, N_CODE), jnp.float32)
    proj = proj.at[0:PROJ_IN].set(p["proj_w"].T)
    proj = proj.at[PROJ_IN].set(p["proj_b"])
    return w, proj


def _round_up(a, m):
    return ((a + m - 1) // m) * m


@jax.jit
def baseline_rnn(x, s, w_pack, proj_pack):
    b = x.shape[0]
    bt = min(MAX_BATCH_TILE, _round_up(b, 8))   # batch tile (sublane-aligned)
    pb = _round_up(b, bt)
    xp = jnp.zeros((pb, N_CODE), jnp.float32).at[:b].set(x.astype(jnp.float32))
    sp = jnp.zeros((pb, N_CODE - K_CODE), jnp.float32).at[:b].set(
        s.astype(jnp.float32))

    out_shape = jax.ShapeDtypeStruct((pb, N_CODE), jnp.float32)
    num_tiles = pb // bt

    if num_tiles == 1:
        # Single tile: no grid, no revolving-buffer pipeline scaffolding.
        out = pl.pallas_call(rnn_kernel, out_shape=out_shape)(
            xp, sp, w_pack, proj_pack)
    else:
        # Batched: grid over batch tiles; weights keep a constant block index so
        # they stay VMEM-resident; batch axis is parallel (both TCs on v7x).
        out = pl.pallas_call(
            rnn_kernel,
            out_shape=out_shape,
            grid=(num_tiles,),
            in_specs=[
                pl.BlockSpec((bt, N_CODE), lambda i: (i, 0)),
                pl.BlockSpec((bt, N_CODE - K_CODE), lambda i: (i, 0)),
                pl.BlockSpec((W_ROWS, HIDDEN), lambda i: (0, 0)),
                pl.BlockSpec((PROJ_ROWS, N_CODE), lambda i: (0, 0)),
            ],
            out_specs=pl.BlockSpec((bt, N_CODE), lambda i: (i, 0)),
            compiler_params=pltpu.CompilerParams(
                dimension_semantics=("parallel",)),
        )(xp, sp, w_pack, proj_pack)
    return out[:b]


def rnn_reference(x, s, p):
    """Pure-JAX reference mirroring the PyTorch forward exactly."""
    xcat = jnp.concatenate([jnp.abs(x), s], axis=1)
    h = [jnp.zeros((x.shape[0], HIDDEN), jnp.float32) for _ in range(DEPTH)]
    outs = []
    for _ in range(T_STEPS):
        inp = xcat
        for l in range(DEPTH):
            pre = (inp @ p["w_ih"][l].T + p["b_ih"][l]
                   + h[l] @ p["w_hh"][l].T + p["b_hh"][l])
            h[l] = jnp.tanh(pre)
            inp = h[l]
        outs.append(h[DEPTH - 1])
    flat = jnp.concatenate(outs, axis=1)             # (B, T*H)
    z = flat @ p["proj_w"].T + p["proj_b"]
    return x - jnp.sign(x) * z


if __name__ == "__main__":
    key = jax.random.PRNGKey(0)
    kp, kx, ks = jax.random.split(key, 3)
    params = init_params(kp)
    w_pack, proj_pack = pack_params(params)

    # Small primary test (single-tile, grid-free path).
    x = jax.random.normal(kx, (B, N_CODE), jnp.float32)
    s = jax.random.normal(ks, (B, N_CODE - K_CODE), jnp.float32)
    out = baseline_rnn(x, s, w_pack, proj_pack)
    jax.block_until_ready(out)
    assert out.shape == (B, N_CODE)
    ref = rnn_reference(x, s, params)
    assert jnp.allclose(out, ref, atol=2e-3, rtol=2e-3), \
        float(jnp.max(jnp.abs(out - ref)))

    # Larger batch exercises the tiled / parallel-grid path (3 tiles of 128).
    kx2, ks2 = jax.random.split(kx)
    xb = jax.random.normal(kx2, (300, N_CODE), jnp.float32)
    sb = jax.random.normal(ks2, (300, N_CODE - K_CODE), jnp.float32)
    outb = baseline_rnn(xb, sb, w_pack, proj_pack)
    jax.block_until_ready(outb)
    refb = rnn_reference(xb, sb, params)
    assert jnp.allclose(outb, refb, atol=2e-3, rtol=2e-3), \
        float(jnp.max(jnp.abs(outb - refb)))

    print("KERNEL_OK")
</pallas_src>

<mosaic_0001>
module attributes {stable_mosaic.version = 11 : i64} {
  func.func @rnn_kernel(%arg0: memref<8x32xf32, #tpu.memory_space<vmem>>, %arg1: memref<8x16xf32, #tpu.memory_space<vmem>>, %arg2: memref<448x128xf32, #tpu.memory_space<vmem>>, %arg3: memref<520x32xf32, #tpu.memory_space<vmem>>, %arg4: memref<8x32xf32, #tpu.memory_space<vmem>>) attributes {dimension_semantics = [], scalar_prefetch = 0 : i64, scratch_operands = 0 : i64, tpu.core_type = #tpu.core_type<tc>} {
    %c0 = arith.constant 0 : index
    %c0_0 = arith.constant 0 : index
    %0 = vector.load %arg0[%c0, %c0_0] : memref<8x32xf32, #tpu.memory_space<vmem>>, vector<8x32xf32>
    %c0_1 = arith.constant 0 : index
    %c0_2 = arith.constant 0 : index
    %1 = vector.load %arg1[%c0_1, %c0_2] : memref<8x16xf32, #tpu.memory_space<vmem>>, vector<8x16xf32>
    %2 = math.absf %0 : vector<8x32xf32>
    %c0_3 = arith.constant 0 : index
    %c0_4 = arith.constant 0 : index
    %3 = vector.load %arg2[%c0_3, %c0_4] : memref<448x128xf32, #tpu.memory_space<vmem>>, vector<32x128xf32>
    %cst = arith.constant dense<0.000000e+00> : vector<8x128xf32>
    %4 = tpu.matmul %2, %3, %cst {dimension_numbers = #tpu.dot_dimension_numbers<[1], [0], [0], [1], [0, 0, 1, 1], [], []>} : vector<8x32xf32>, vector<32x128xf32>, vector<8x128xf32> -> vector<8x128xf32>
    %c32 = arith.constant 32 : index
    %c0_5 = arith.constant 0 : index
    %5 = vector.load %arg2[%c32, %c0_5] : memref<448x128xf32, #tpu.memory_space<vmem>>, vector<16x128xf32>
    %cst_6 = arith.constant dense<0.000000e+00> : vector<8x128xf32>
    %6 = tpu.matmul %1, %5, %cst_6 {dimension_numbers = #tpu.dot_dimension_numbers<[1], [0], [0], [1], [0, 0, 1, 1], [], []>} : vector<8x16xf32>, vector<16x128xf32>, vector<8x128xf32> -> vector<8x128xf32>
    %7 = arith.addf %4, %6 : vector<8x128xf32>
    %c432 = arith.constant 432 : index
    %c0_7 = arith.constant 0 : index
    %8 = vector.load %arg2[%c432, %c0_7] : memref<448x128xf32, #tpu.memory_space<vmem>>, vector<1x128xf32>
    %9 = vector.broadcast %8 : vector<1x128xf32> to vector<8x128xf32>
    %10 = arith.addf %7, %9 : vector<8x128xf32>
    %c48 = arith.constant 48 : index
    %c0_8 = arith.constant 0 : index
    %11 = vector.load %arg2[%c48, %c0_8] : memref<448x128xf32, #tpu.memory_space<vmem>>, vector<128x128xf32>
    %12 = math.tanh %10 : vector<8x128xf32>
    %cst_9 = arith.constant dense<0.000000e+00> : vector<8x128xf32>
    %13 = tpu.matmul %12, %11, %cst_9 {dimension_numbers = #tpu.dot_dimension_numbers<[1], [0], [0], [1], [0, 0, 1, 1], [], []>} : vector<8x128xf32>, vector<128x128xf32>, vector<8x128xf32> -> vector<8x128xf32>
    %14 = arith.addf %10, %13 : vector<8x128xf32>
    %15 = math.tanh %14 : vector<8x128xf32>
    %cst_10 = arith.constant dense<0.000000e+00> : vector<8x128xf32>
    %16 = tpu.matmul %15, %11, %cst_10 {dimension_numbers = #tpu.dot_dimension_numbers<[1], [0], [0], [1], [0, 0, 1, 1], [], []>} : vector<8x128xf32>, vector<128x128xf32>, vector<8x128xf32> -> vector<8x128xf32>
    %17 = arith.addf %10, %16 : vector<8x128xf32>
    %18 = math.tanh %17 : vector<8x128xf32>
    %cst_11 = arith.constant dense<0.000000e+00> : vector<8x128xf32>
    %19 = tpu.matmul %18, %11, %cst_11 {dimension_numbers = #tpu.dot_dimension_numbers<[1], [0], [0], [1], [0, 0, 1, 1], [], []>} : vector<8x128xf32>, vector<128x128xf32>, vector<8x128xf32> -> vector<8x128xf32>
    %20 = arith.addf %10, %19 : vector<8x128xf32>
    %21 = math.tanh %20 : vector<8x128xf32>
    %22 = tpu.concatenate %12, %15, %18, %21 in 0 : vector<8x128xf32>, vector<8x128xf32>, vector<8x128xf32>, vector<8x128xf32> -> vector<32x128xf32>
    %c304 = arith.constant 304 : index
    %c0_12 = arith.constant 0 : index
    %23 = vector.load %arg2[%c304, %c0_12] : memref<448x128xf32, #tpu.memory_space<vmem>>, vector<128x128xf32>
    %c440 = arith.constant 440 : index
    %c0_13 = arith.constant 0 : index
    %24 = vector.load %arg2[%c440, %c0_13] : memref<448x128xf32, #tpu.memory_space<vmem>>, vector<1x128xf32>
    %cst_14 = arith.constant dense<0.000000e+00> : vector<32x128xf32>
    %25 = tpu.matmul %22, %23, %cst_14 {dimension_numbers = #tpu.dot_dimension_numbers<[1], [0], [0], [1], [0, 0, 1, 1], [], []>} : vector<32x128xf32>, vector<128x128xf32>, vector<32x128xf32> -> vector<32x128xf32>
    %26 = vector.broadcast %24 : vector<1x128xf32> to vector<32x128xf32>
    %27 = arith.addf %25, %26 : vector<32x128xf32>
    %c176 = arith.constant 176 : index
    %c0_15 = arith.constant 0 : index
    %28 = vector.load %arg2[%c176, %c0_15] : memref<448x128xf32, #tpu.memory_space<vmem>>, vector<128x128xf32>
    %29 = vector.extract_strided_slice %27 {offsets = [0, 0], sizes = [8, 128], strides = [1, 1]} : vector<32x128xf32> to vector<8x128xf32>
    %30 = math.tanh %29 : vector<8x128xf32>
    %31 = vector.extract_strided_slice %27 {offsets = [8, 0], sizes = [8, 128], strides = [1, 1]} : vector<32x128xf32> to vector<8x128xf32>
    %cst_16 = arith.constant dense<0.000000e+00> : vector<8x128xf32>
    %32 = tpu.matmul %30, %28, %cst_16 {dimension_numbers = #tpu.dot_dimension_numbers<[1], [0], [0], [1], [0, 0, 1, 1], [], []>} : vector<8x128xf32>, vector<128x128xf32>, vector<8x128xf32> -> vector<8x128xf32>
    %33 = arith.addf %31, %32 : vector<8x128xf32>
    %34 = math.tanh %33 : vector<8x128xf32>
    %35 = vector.extract_strided_slice %27 {offsets = [16, 0], sizes = [8, 128], strides = [1, 1]} : vector<32x128xf32> to vector<8x128xf32>
    %cst_17 = arith.constant dense<0.000000e+00> : vector<8x128xf32>
    %36 = tpu.matmul %34, %28, %cst_17 {dimension_numbers = #tpu.dot_dimension_numbers<[1], [0], [0], [1], [0, 0, 1, 1], [], []>} : vector<8x128xf32>, vector<128x128xf32>, vector<8x128xf32> -> vector<8x128xf32>
    %37 = arith.addf %35, %36 : vector<8x128xf32>
    %38 = math.tanh %37 : vector<8x128xf32>
    %39 = vector.extract_strided_slice %27 {offsets = [24, 0], sizes = [8, 128], strides = [1, 1]} : vector<32x128xf32> to vector<8x128xf32>
    %cst_18 = arith.constant dense<0.000000e+00> : vector<8x128xf32>
    %40 = tpu.matmul %38, %28, %cst_18 {dimension_numbers = #tpu.dot_dimension_numbers<[1], [0], [0], [1], [0, 0, 1, 1], [], []>} : vector<8x128xf32>, vector<128x128xf32>, vector<8x128xf32> -> vector<8x128xf32>
    %41 = arith.addf %39, %40 : vector<8x128xf32>
    %42 = math.tanh %41 : vector<8x128xf32>
    %43 = tpu.concatenate %30, %34, %38, %42 in 1 : vector<8x128xf32>, vector<8x128xf32>, vector<8x128xf32>, vector<8x128xf32> -> vector<8x512xf32>
    %c0_19 = arith.constant 0 : index
    %c0_20 = arith.constant 0 : index
    %44 = vector.load %arg3[%c0_19, %c0_20] : memref<520x32xf32, #tpu.memory_space<vmem>>, vector<512x32xf32>
    %cst_21 = arith.constant dense<0.000000e+00> : vector<8x32xf32>
    %45 = tpu.matmul %43, %44, %cst_21 {dimension_numbers = #tpu.dot_dimension_numbers<[1], [0], [0], [1], [0, 0, 1, 1], [], []>} : vector<8x512xf32>, vector<512x32xf32>, vector<8x32xf32> -> vector<8x32xf32>
    %c512 = arith.constant 512 : index
    %c0_22 = arith.constant 0 : index
    %46 = vector.load %arg3[%c512, %c0_22] : memref<520x32xf32, #tpu.memory_space<vmem>>, vector<1x32xf32>
    %47 = vector.broadcast %46 : vector<1x32xf32> to vector<8x32xf32>
    %48 = arith.addf %45, %47 : vector<8x32xf32>
    %cst_23 = arith.constant 0.000000e+00 : f32
    %49 = vector.broadcast %cst_23 : f32 to vector<8x32xf32>
    %50 = arith.cmpf ogt, %0, %49 : vector<8x32xf32>
    %cst_24 = arith.constant 0.000000e+00 : f32
    %51 = vector.broadcast %cst_24 : f32 to vector<8x32xf32>
    %52 = arith.cmpf olt, %0, %51 : vector<8x32xf32>
    %cst_25 = arith.constant -1.000000e+00 : f32
    %cst_26 = arith.constant 0.000000e+00 : f32
    %53 = vector.broadcast %cst_25 : f32 to vector<8x32xf32>
    %54 = vector.broadcast %cst_26 : f32 to vector<8x32xf32>
    %55 = arith.select %52, %53, %54 : vector<8x32xi1>, vector<8x32xf32>
    %cst_27 = arith.constant 1.000000e+00 : f32
    %56 = vector.broadcast %cst_27 : f32 to vector<8x32xf32>
    %57 = arith.select %50, %56, %55 : vector<8x32xi1>, vector<8x32xf32>
    %58 = arith.mulf %57, %48 : vector<8x32xf32>
    %59 = arith.subf %0, %58 : vector<8x32xf32>
    %c0_28 = arith.constant 0 : index
    %c0_29 = arith.constant 0 : index
    %60 = vector.load %arg4[%c0_28, %c0_29] : memref<8x32xf32, #tpu.memory_space<vmem>>, vector<8x32xf32>
    tpu.vector_store %arg4[%c0_28, %c0_29], %59 {strides = array<i32>} : memref<8x32xf32, #tpu.memory_space<vmem>>, vector<8x32xf32>,
    return
  }
}

</mosaic_0001>

<bundles_post_ra>
// kernel: baseline_rnn.1
= control target key start
LH: loop header
LB: loop body
LE: loop exit
PB: predicated region body
PF: predicated region fallthrough
CT: control target
= control target key end

     0   :  { %v1711_v0 = vmov 0.0|0.0   ;;  %vm1712_vm0 = vmmov 0   ;;  %v1713_v3 = vmov 0.0   ;;  %vm26_vm1 = vcmask 130048   ;;  %s2230_s2 = inlined_call_operand.vmem [shape: f32[448,128], index: 2, kind: input, shape index: {}]   ;;  %s2231_s1 = inlined_call_operand.vmem [shape: f32[8,16], index: 1, kind: input, shape index: {}]   ;;  %s2232_s0 = inlined_call_operand.vmem [shape: f32[8,32], index: 0, kind: input, shape index: {}]   ;;  %s2233_s3 = inlined_call_operand.vmem [shape: f32[520,32], index: 3, kind: input, shape index: {}]   ;;  %s2234_s4 = inlined_call_operand.vmem [shape: f32[8,32], index: 4, kind: output, shape index: {}]  }
   0x1   :  { %1443 = vmatprep.subr.bf16.mxu1 %v1711_v0  ;;  %v24_v1 = vld [vmem:[%s2230_s2 + $0x20] sm:$0xff]  ;;  %v25_v2 = vld [vmem:[%s2230_s2 + $0x28] sm:$0xff]  ;;  %1181 = vmatprep.mubr.msk.f32.mxu1 %vm1712_vm0, %v1713_v3  ;;  %v180_v8 = vld [vmem:[%s2230_s2 + $0x30] sm:$0xff]  ;;  %vm100_vm2 = vcmask 261120  }
   0x2   :  { %v1444_v4 = vpack.c.bf16 %v25_v2, %v24_v1  ;;  %v20_v5 = vld [vmem:[%s2230_s2] sm:$0xff]  ;;  %v21_v6 = vld [vmem:[%s2230_s2 + $0x8] sm:$0xff]  ;;  %1452 = vmatprep.subr.bf16.mxu0 %v1711_v0  ;;  %1227 = vmatprep.mubr.msk.f32.mxu0 %vm1712_vm0, %v1713_v3  ;;  %v181_v10 = vld [vmem:[%s2230_s2 + $0x38] sm:$0xff] }
   0x3   :  { %v18_v7 = vld [vmem:[%s2231_s1] sm:$0xff]  ;;  %v1447_v9 = vpack.c.bf16 %v21_v6, %v20_v5  ;;  %v183_v12 = vld [vmem:[%s2230_s2 + $0x48] sm:$0xff]  ;;  %v22_v13 = vld [vmem:[%s2230_s2 + $0x10] sm:$0xff]  ;;  %v1779_v15 = vpack.c.bf16 %v181_v10, %v180_v8 }
   0x4   :  { %1445 = vmatpush3.bf16.msra.mxu1 %v1444_v4  ;;  %v182_v11 = vld [vmem:[%s2230_s2 + $0x40] sm:$0xff]  ;;  %v23_v14 = vld [vmem:[%s2230_s2 + $0x18] sm:$0xff]  ;;  %v184_v20 = vld [vmem:[%s2230_s2 + $0x50] sm:$0xff] }
   0x5   :  { %1446 = vmatprep.subr.bf16.mxu1 %v1711_v0  ;;  %1454 = vmatpush3.bf16.msra.mxu0 %v1779_v15  ;;  %v1782_v16 = vpack.c.bf16 %v183_v12, %v182_v11  ;;  %v1450_v17 = vpack.c.bf16 %v23_v14, %v22_v13  ;;  %v1789_v18 = vld [vmem:[%s2232_s0] sm:$0xff]  ;;  %v185_v21 = vld [vmem:[%s2230_s2 + $0x58] sm:$0xff]  ;;  %v187_v24 = vld [vmem:[%s2230_s2 + $0x68] sm:$0xff] }
   0x6   :  { %1455 = vmatprep.subr.bf16.mxu0 %v1711_v0  ;;  %v19_v19 = vand.u32 2147483647, %v1789_v18  ;;  %v1459_v22 = vpack.c.bf16 %v185_v21, %v184_v20  ;;  %v186_v23 = vld [vmem:[%s2230_s2 + $0x60] sm:$0xff]  ;;  %v188_v26 = vld [vmem:[%s2230_s2 + $0x70] sm:$0xff]  ;;  %v189_v27 = vld [vmem:[%s2230_s2 + $0x78] sm:$0xff]  ;;  %vm962_vm3 = vcmp.lt.f32.partialorder %v1789_v18, 0.0 }
   0x7   :  { %1182 = vmatmul.mubr.msk.f32.vlgmr.msra.gmra.mrb[0].mxu1 %vm26_vm1, %v18_v7  ;;  %v1462_v25 = vpack.c.bf16 %v187_v24, %v186_v23  ;;  %v1465_v28 = vpack.c.bf16 %v189_v27, %v188_v26  ;;  %v190_v29 = vld [vmem:[%s2230_s2 + $0x80] sm:$0xff]  ;;  %v191_v30 = vld [vmem:[%s2230_s2 + $0x88] sm:$0xff]  ;;  %v192_v32 = vld [vmem:[%s2230_s2 + $0x90] sm:$0xff]  ;;  %vm961_vm4 = vcmp.gt.f32.partialorder %v1789_v18, 0.0 }
   0x8   :  { %1448 = vmatpush3.bf16.msra.mxu1 %v1447_v9  ;;  %1192 = vmatprep.mubr.msk.f32.mxu1 %vm1712_vm0, %v1713_v3  ;;  %v1468_v31 = vpack.c.bf16 %v191_v30, %v190_v29  ;;  %v193_v33 = vld [vmem:[%s2230_s2 + $0x98] sm:$0xff]  ;;  %v194_v35 = vld [vmem:[%s2230_s2 + $0xa0] sm:$0xff]  ;;  %v195_v36 = vld [vmem:[%s2230_s2 + $0xa8] sm:$0xff] }
   0x9   :  { %1449 = vmatprep.subr.bf16.mxu1 %v1711_v0  ;;  %1457 = vmatpush3.bf16.msra.mxu0 %v1782_v16  ;;  %v1471_v34 = vpack.c.bf16 %v193_v33, %v192_v32  ;;  %v1474_v37 = vpack.c.bf16 %v195_v36, %v194_v35  ;;  %v974_v41 = vld [vmem:[%s2230_s2 + $0x1b0] ss:$0 sm:$0xff]  ;;  %v414_v47 = vld [vmem:[%s2230_s2 + $0x138] sm:$0xff]  ;;  %v415_v52 = vld [vmem:[%s2230_s2 + $0x140] sm:$0xff] }
   0xa   :  { %1458 = vmatprep.subr.bf16.mxu0 %v1711_v0  ;;  %v413_v46 = vld [vmem:[%s2230_s2 + $0x130] sm:$0xff]  ;;  %v416_v53 = vld [vmem:[%s2230_s2 + $0x148] sm:$0xff]  ;;  %v418_v57 = vld [vmem:[%s2230_s2 + $0x158] sm:$0xff] }
   0xb   :  { %v1524_v48 = vpack.c.bf16 %v414_v47, %v413_v46  ;;  %v1528_v54 = vpack.c.bf16 %v416_v53, %v415_v52  ;;  %v417_v56 = vld [vmem:[%s2230_s2 + $0x150] sm:$0xff]  ;;  %v419_v59 = vld [vmem:[%s2230_s2 + $0x160] sm:$0xff]  ;;  %v420_v60 = vld [vmem:[%s2230_s2 + $0x168] sm:$0xff] }
   0xc   :  { %1451 = vmatpush3.bf16.msra.mxu1 %v1450_v17  ;;  %v1532_v58 = vpack.c.bf16 %v418_v57, %v417_v56  ;;  %v1536_v61 = vpack.c.bf16 %v420_v60, %v419_v59  ;;  %v421_v62 = vld [vmem:[%s2230_s2 + $0x170] sm:$0xff]  ;;  %v422_v63 = vld [vmem:[%s2230_s2 + $0x178] sm:$0xff]  ;;  %v423_v2 = vld [vmem:[%s2230_s2 + $0x180] sm:$0xff] }
   0xd   :  { %1476 = vmatprep.subr.bf16.mxu1 %v1711_v0  ;;  %1460 = vmatpush3.bf16.msra.mxu0 %v1459_v22  ;;  %v1540_v1 = vpack.c.bf16 %v422_v63, %v421_v62  ;;  %v424_v4 = vld [vmem:[%s2230_s2 + $0x188] sm:$0xff]  ;;  %v425_v6 = vld [vmem:[%s2230_s2 + $0x190] sm:$0xff]  ;;  %v426_v7 = vld [vmem:[%s2230_s2 + $0x198] sm:$0xff] }
   0xe   :  { %1461 = vmatprep.subr.bf16.mxu0 %v1711_v0  ;;  %v1544_v5 = vpack.c.bf16 %v424_v4, %v423_v2  ;;  %v1548_v8 = vpack.c.bf16 %v426_v7, %v425_v6  ;;  %v427_v9 = vld [vmem:[%s2230_s2 + $0x1a0] sm:$0xff]  ;;  %v428_v10 = vld [vmem:[%s2230_s2 + $0x1a8] sm:$0xff]  ;;  %v519_v12 = vld [vmem:[%s2230_s2 + $0xb0] sm:$0xff] }
   0xf   :  { %1193 = vmatmul.mubr.msk.f32.vlgmr.msra.gmra.mrb[2].mxu1 %vm100_vm2, %v19_v19  ;;  %v1552_v11 = vpack.c.bf16 %v428_v10, %v427_v9  ;;  %v520_v13 = vld [vmem:[%s2230_s2 + $0xb8] sm:$0xff]  ;;  %v523_v19 = vld [vmem:[%s2230_s2 + $0xd0] sm:$0xff]  ;;  %v526_v23 = vld [vmem:[%s2230_s2 + $0xe8] sm:$0xff] }
  0x10   :  { %1478 = vmatpush3.bf16.msra.mxu1 %v1779_v15  ;;  %1262 = vmatprep.mubr.msk.f32.mxu1 %vm1712_vm0, %v1713_v3  ;;  %v1925_v14 = vpack.c.bf16 %v520_v13, %v519_v12  ;;  %v524_v20 = vld [vmem:[%s2230_s2 + $0xd8] sm:$0xff]  ;;  %v530_v29 = vld [vmem:[%s2230_s2 + $0x108] sm:$0xff]  ;;  %v768_v47 = vld [vmem:[%s2233_s3 + $0x80] sm:$0xff] }
  0x11   :  { %1479 = vmatprep.subr.bf16.mxu1 %v1711_v0  ;;  %1463 = vmatpush3.bf16.msra.mxu0 %v1462_v25  ;;  %v1563_v21 = vpack.c.bf16 %v524_v20, %v523_v19  ;;  %v528_v26 = vld [vmem:[%s2230_s2 + $0xf8] sm:$0xff]  ;;  %v534_v35 = vld [vmem:[%s2230_s2 + $0x128] sm:$0xff]  ;;  %v752_v57 = vld [vmem:[%s2233_s3] sm:$0xff] }
  0x12   :  { %1464 = vmatprep.subr.bf16.mxu0 %v1711_v0  ;;  %v532_v32 = vld [vmem:[%s2230_s2 + $0x118] sm:$0xff]  ;;  %v754_v62 = vld [vmem:[%s2233_s3 + $0x10] sm:$0xff]  ;;  %v772_v2 = vld [vmem:[%s2233_s3 + $0xa0] sm:$0xff] }
  0x13   :  { %v771_v59 = vld [vmem:[%s2233_s3 + $0x98] sm:$0xff]  ;;  %v773_v4 = vld [vmem:[%s2233_s3 + $0xa8] sm:$0xff]  ;;  %v756_v7 = vld [vmem:[%s2233_s3 + $0x20] sm:$0xff] }
  0x14   :  { %1481 = vmatpush3.bf16.msra.mxu1 %v1782_v16  ;;  %v755_v63 = vld [vmem:[%s2233_s3 + $0x18] sm:$0xff]  ;;  %v1636_v6 = vpack.c.bf16 %v773_v4, %v772_v2  ;;  %v774_v9 = vld [vmem:[%s2233_s3 + $0xb0] sm:$0xff]  ;;  %v760_v20 = vld [vmem:[%s2233_s3 + $0x40] sm:$0xff] }
  0x15   :  { %1482 = vmatprep.subr.bf16.mxu1 %v1711_v0  ;;  %1466 = vmatpush3.bf16.msra.mxu0 %v1465_v28  ;;  %v775_v10 = vld [vmem:[%s2233_s3 + $0xb8] sm:$0xff]  ;;  %v758_v13 = vld [vmem:[%s2233_s3 + $0x30] sm:$0xff] }
  0x16   :  { %1467 = vmatprep.subr.bf16.mxu0 %v1711_v0  ;;  %v1640_v12 = vpack.c.bf16 %v775_v10, %v774_v9  ;;  %v806_v2 = vld [vmem:[%s2233_s3 + $0x1b0] sm:$0xff]  ;;  %v807_v4 = vld [vmem:[%s2233_s3 + $0x1b8] sm:$0xff]  ;;  %v808_v9 = vld [vmem:[%s2233_s3 + $0x1c0] sm:$0xff] }
  0x17   :  { %v809_v10 = vld [vmem:[%s2233_s3 + $0x1c8] sm:$0xff] }
  0x18   :  { %1484 = vmatpush3.bf16.msra.mxu1 %v1459_v22 }
  0x19   :  { %1485 = vmatprep.subr.bf16.mxu1 %v1711_v0  ;;  %1469 = vmatpush3.bf16.msra.mxu0 %v1468_v31 }
  0x1a   :  { %1470 = vmatprep.subr.bf16.mxu0 %v1711_v0 }
  0x1c   :  { %1487 = vmatpush3.bf16.msra.mxu1 %v1462_v25 }
  0x1d   :  { %1488 = vmatprep.subr.bf16.mxu1 %v1711_v0  ;;  %1472 = vmatpush3.bf16.msra.mxu0 %v1471_v34 }
  0x1e   :  { %1473 = vmatprep.subr.bf16.mxu0 %v1711_v0 }
  0x20   :  { %1490 = vmatpush3.bf16.msra.mxu1 %v1465_v28 }
  0x21   :  { %1491 = vmatprep.subr.bf16.mxu1 %v1711_v0  ;;  %1475 = vmatpush3.bf16.msra.mxu0 %v1474_v37 }
  0x22   :  { %1500 = vmatprep.subr.bf16.mxu0 %v1711_v0 }
  0x24   :  { %1493 = vmatpush3.bf16.msra.mxu1 %v1468_v31 }
  0x25   :  { %1494 = vmatprep.subr.bf16.mxu1 %v1711_v0 }
  0x28   :  { %1496 = vmatpush3.bf16.msra.mxu1 %v1471_v34 }
  0x29   :  { %1497 = vmatprep.subr.bf16.mxu1 %v1711_v0 }
  0x2c   :  { %1499 = vmatpush3.bf16.msra.mxu1 %v1474_v37 }
  0x2d   :  { %1525 = vmatprep.subr.bf16.mxu1 %v1524_v48 }
  0xda   :  { %v96_v38 = vpop.f32.mrb[0].mxu1 }
  0xdb   :  { %v1183_v39 = vpop.f32.mrb[1].mxu1 }
  0xe2   :  { %v170_v40 = vpop.f32.mrb[2].mxu1 }
  0xe3   :  { %v171_v42 = vadd.f32 %v170_v40, %v96_v38  ;;  %v1194_v43 = vpop.f32.mrb[3].mxu1 }
  0xe5   :  { %v1854_v44 = vadd.f32 %v974_v41, %v171_v42  ;;  %v1992_v41 = vld [vmem:[%s2230_s2 + $0x1b8] ss:$0 sm:$0xff] }
  0xe7   :  { %1695 = vtanh.f32 %v1854_v44 }
  0xf1   :  { %v1696_v45 = vpop.eup %1695 }
  0xf2   :  { %1228 = vmatmul.mubr.f32.vlgmr.msra.gmra.mrb[0].mxu0 %v1696_v45 }
  0xf3   :  { %1502 = vmatpush3.bf16.msra.mxu0 %v1779_v15  ;;  %1297 = vmatprep.mubr.msk.f32.mxu0 %vm1712_vm0, %v1713_v3  ;;  %v521_v15 = vld [vmem:[%s2230_s2 + $0xc0] sm:$0xff] }
  0xf4   :  { %1503 = vmatprep.subr.bf16.mxu0 %v1711_v0 }
  0xf7   :  { %1505 = vmatpush3.bf16.msra.mxu0 %v1782_v16  ;;  %v522_v16 = vld [vmem:[%s2230_s2 + $0xc8] sm:$0xff] }
  0xf8   :  { %1506 = vmatprep.subr.bf16.mxu0 %v1711_v0  ;;  %v1935_v17 = vpack.c.bf16 %v522_v16, %v521_v15  ;;  %v776_v15 = vld [vmem:[%s2233_s3 + $0xc0] sm:$0xff]  ;;  %v777_v16 = vld [vmem:[%s2233_s3 + $0xc8] sm:$0xff] }
  0xf9   :  { %v1644_v19 = vpack.c.bf16 %v777_v16, %v776_v15  ;;  %v792_v16 = vld [vmem:[%s2233_s3 + $0x140] sm:$0xff] }
  0xfb   :  { %1508 = vmatpush3.bf16.msra.mxu0 %v1459_v22  ;;  %v525_v22 = vld [vmem:[%s2230_s2 + $0xe0] sm:$0xff] }
  0xfc   :  { %1509 = vmatprep.subr.bf16.mxu0 %v1711_v0  ;;  %v1566_v24 = vpack.c.bf16 %v526_v23, %v525_v22  ;;  %v778_v22 = vld [vmem:[%s2233_s3 + $0xd0] sm:$0xff]  ;;  %v779_v23 = vld [vmem:[%s2233_s3 + $0xd8] sm:$0xff] }
  0xff   :  { %1511 = vmatpush3.bf16.msra.mxu0 %v1462_v25  ;;  %v527_v25 = vld [vmem:[%s2230_s2 + $0xf0] sm:$0xff] }
 0x100   :  { %1512 = vmatprep.subr.bf16.mxu0 %v1711_v0  ;;  %v1569_v27 = vpack.c.bf16 %v528_v26, %v527_v25  ;;  %v1648_v25 = vpack.c.bf16 %v779_v23, %v778_v22  ;;  %v762_v26 = vld [vmem:[%s2233_s3 + $0x50] sm:$0xff] }
 0x101   :  { %v794_v23 = vld [vmem:[%s2233_s3 + $0x150] sm:$0xff] }
 0x103   :  { %1514 = vmatpush3.bf16.msra.mxu0 %v1465_v28  ;;  %v529_v28 = vld [vmem:[%s2230_s2 + $0x100] sm:$0xff] }
 0x104   :  { %1515 = vmatprep.subr.bf16.mxu0 %v1711_v0  ;;  %v1572_v30 = vpack.c.bf16 %v530_v29, %v529_v28  ;;  %v780_v28 = vld [vmem:[%s2233_s3 + $0xe0] sm:$0xff]  ;;  %v781_v29 = vld [vmem:[%s2233_s3 + $0xe8] sm:$0xff] }
 0x107   :  { %1517 = vmatpush3.bf16.msra.mxu0 %v1468_v31  ;;  %v531_v31 = vld [vmem:[%s2230_s2 + $0x110] sm:$0xff] }
 0x108   :  { %1518 = vmatprep.subr.bf16.mxu0 %v1711_v0  ;;  %v1575_v33 = vpack.c.bf16 %v532_v32, %v531_v31  ;;  %v1652_v31 = vpack.c.bf16 %v781_v29, %v780_v28  ;;  %v764_v32 = vld [vmem:[%s2233_s3 + $0x60] sm:$0xff] }
 0x109   :  { %v796_v28 = vld [vmem:[%s2233_s3 + $0x160] sm:$0xff] }
 0x10b   :  { %1520 = vmatpush3.bf16.msra.mxu0 %v1471_v34  ;;  %v533_v34 = vld [vmem:[%s2230_s2 + $0x120] sm:$0xff] }
 0x10c   :  { %1521 = vmatprep.subr.bf16.mxu0 %v1711_v0  ;;  %v1578_v36 = vpack.c.bf16 %v534_v35, %v533_v34  ;;  %v782_v34 = vld [vmem:[%s2233_s3 + $0xf0] sm:$0xff]  ;;  %v783_v35 = vld [vmem:[%s2233_s3 + $0xf8] sm:$0xff] }
 0x10f   :  { %1523 = vmatpush3.bf16.msra.mxu0 %v1474_v37 }
 0x110   :  { %1556 = vmatprep.subr.bf16.mxu0 %v1711_v0 }
 0x1c5   :  { %v263_v49 = vpop.f32.mrb[0].mxu0 }
 0x1c6   :  { %v267_v50 = vadd.f32 %v263_v49, %v1854_v44  ;;  %v1229_v51 = vpop.f32.mrb[1].mxu0 }
 0x1c8   :  { %1697 = vtanh.f32 %v267_v50 }
 0x1d2   :  { %v1698_v55 = vpop.eup %1697 }
 0x1d3   :  { %1263 = vmatmul.mubr.f32.vlgmr.msra.gmra.mrb[4].mxu1 %v1698_v55 }
 0x1d4   :  { %1527 = vmatpush3.bf16.msra.mxu1 %v1524_v48  ;;  %1332 = vmatprep.mubr.f32.mxu1 %v1696_v45  ;;  %v769_v48 = vld [vmem:[%s2233_s3 + $0x88] sm:$0xff] }
 0x1d5   :  { %1529 = vmatprep.subr.bf16.mxu1 %v1528_v54  ;;  %v1628_v49 = vpack.c.bf16 %v769_v48, %v768_v47 }
 0x1d8   :  { %1531 = vmatpush3.bf16.msra.mxu1 %v1528_v54 }
 0x1d9   :  { %1533 = vmatprep.subr.bf16.mxu1 %v1532_v58 }
 0x1dc   :  { %1535 = vmatpush3.bf16.msra.mxu1 %v1532_v58  ;;  %v770_v58 = vld [vmem:[%s2233_s3 + $0x90] sm:$0xff] }
 0x1dd   :  { %1537 = vmatprep.subr.bf16.mxu1 %v1536_v61 }
 0x1e0   :  { %1539 = vmatpush3.bf16.msra.mxu1 %v1536_v61  ;;  %v1632_v61 = vpack.c.bf16 %v771_v59, %v770_v58  ;;  %v804_v59 = vld [vmem:[%s2233_s3 + $0x1a0] sm:$0xff] }
 0x1e1   :  { %1541 = vmatprep.subr.bf16.mxu1 %v1540_v1 }
 0x1e4   :  { %1543 = vmatpush3.bf16.msra.mxu1 %v1540_v1 }
 0x1e5   :  { %1545 = vmatprep.subr.bf16.mxu1 %v1544_v5 }
 0x1e8   :  { %1547 = vmatpush3.bf16.msra.mxu1 %v1544_v5  ;;  %v1634_v5 = vpack.c.bf16 %v755_v63, %v754_v62  ;;  %v788_v63 = vld [vmem:[%s2233_s3 + $0x120] sm:$0xff] }
 0x1e9   :  { %1549 = vmatprep.subr.bf16.mxu1 %v1548_v8 }
 0x1ec   :  { %1551 = vmatpush3.bf16.msra.mxu1 %v1548_v8  ;;  %v757_v8 = vld [vmem:[%s2233_s3 + $0x28] sm:$0xff] }
 0x1ed   :  { %1553 = vmatprep.subr.bf16.mxu1 %v1552_v11 }
 0x1f0   :  { %1555 = vmatpush3.bf16.msra.mxu1 %v1552_v11  ;;  %v1638_v11 = vpack.c.bf16 %v757_v8, %v756_v7  ;;  %v790_v7 = vld [vmem:[%s2233_s3 + $0x130] sm:$0xff]  ;;  %v791_v8 = vld [vmem:[%s2233_s3 + $0x138] sm:$0xff] }
 0x1f1   :  { %1580 = vmatprep.subr.bf16.mxu1 %v1711_v0 }
 0x1f3   :  { %1333 = vmatmul.mubr.f32.vlgmr.msra.gmra.mrb[6].mxu1 %v1698_v55 }
 0x1f4   :  { %1582 = vmatpush3.bf16.msra.mxu1 %v1925_v14 }
 0x1f5   :  { %1583 = vmatprep.subr.bf16.mxu1 %v1711_v0 }
 0x1f8   :  { %1585 = vmatpush3.bf16.msra.mxu1 %v1935_v17 }
 0x1f9   :  { %1586 = vmatprep.subr.bf16.mxu1 %v1711_v0 }
 0x1fc   :  { %1588 = vmatpush3.bf16.msra.mxu1 %v1563_v21 }
 0x1fd   :  { %1589 = vmatprep.subr.bf16.mxu1 %v1711_v0 }
 0x200   :  { %1591 = vmatpush3.bf16.msra.mxu1 %v1566_v24 }
 0x201   :  { %1592 = vmatprep.subr.bf16.mxu1 %v1711_v0 }
 0x204   :  { %1594 = vmatpush3.bf16.msra.mxu1 %v1569_v27 }
 0x205   :  { %1595 = vmatprep.subr.bf16.mxu1 %v1711_v0 }
 0x208   :  { %1597 = vmatpush3.bf16.msra.mxu1 %v1572_v30 }
 0x209   :  { %1598 = vmatprep.subr.bf16.mxu1 %v1711_v0 }
 0x20c   :  { %1600 = vmatpush3.bf16.msra.mxu1 %v1575_v33 }
 0x20d   :  { %1601 = vmatprep.subr.bf16.mxu1 %v1711_v0 }
 0x210   :  { %1603 = vmatpush3.bf16.msra.mxu1 %v1578_v36 }
 0x211   :  { %1629 = vmatprep.subr.bf16.mxu1 %v1628_v49 }
 0x2a6   :  { %v335_v37 = vpop.f32.mrb[4].mxu1 }
 0x2a7   :  { %v339_v38 = vadd.f32 %v335_v37, %v1854_v44  ;;  %v1264_v39 = vpop.f32.mrb[5].mxu1  ;;  %v1656_v37 = vpack.c.bf16 %v783_v35, %v782_v34  ;;  %v798_v35 = vld [vmem:[%s2233_s3 + $0x170] sm:$0xff] }
 0x2a8   :  { %v767_v39 = vld [vmem:[%s2233_s3 + $0x78] sm:$0xff] }
 0x2a9   :  { %1699 = vtanh.f32 %v339_v38  ;;  %v766_v38 = vld [vmem:[%s2233_s3 + $0x70] sm:$0xff] }
 0x2b3   :  { %v1700_v40 = vpop.eup %1699 }
 0x2b4   :  { %1298 = vmatmul.mubr.f32.vlgmr.msra.gmra.mrb[2].mxu0 %v1700_v40  ;;  %1335 = vmatprep.mubr.f32.mxu1 %v1700_v40  ;;  %v1658_v40 = vpack.c.bf16 %v767_v39, %v766_v38 }
 0x2b5   :  { %1558 = vmatpush3.bf16.msra.mxu0 %v1925_v14  ;;  %1370 = vmatprep.mubr.msk.f32.mxu0 %vm1712_vm0, %v1713_v3 }
 0x2b6   :  { %1559 = vmatprep.subr.bf16.mxu0 %v1711_v0 }
 0x2b9   :  { %1561 = vmatpush3.bf16.msra.mxu0 %v1935_v17 }
 0x2ba   :  { %1562 = vmatprep.subr.bf16.mxu0 %v1711_v0 }
 0x2bd   :  { %1564 = vmatpush3.bf16.msra.mxu0 %v1563_v21 }
 0x2be   :  { %1565 = vmatprep.subr.bf16.mxu0 %v1711_v0 }
 0x2c1   :  { %1567 = vmatpush3.bf16.msra.mxu0 %v1566_v24 }
 0x2c2   :  { %1568 = vmatprep.subr.bf16.mxu0 %v1711_v0 }
 0x2c5   :  { %1570 = vmatpush3.bf16.msra.mxu0 %v1569_v27 }
 0x2c6   :  { %v1334_v42 = vpop.f32.mrb[6].mxu1  ;;  %1571 = vmatprep.subr.bf16.mxu0 %v1711_v0 }
 0x2c7   :  { %v500_v43 = vpop.f32.mrb[7].mxu1 }
 0x2c8   :  { %v501_v45 = vadd.f32 %v1992_v41, %v500_v43  ;;  %v801_v43 = vld [vmem:[%s2233_s3 + $0x188] sm:$0xff] }
 0x2c9   :  { %1573 = vmatpush3.bf16.msra.mxu0 %v1572_v30 }
 0x2ca   :  { %1701 = vtanh.f32 %v501_v45  ;;  %1574 = vmatprep.subr.bf16.mxu0 %v1711_v0 }
 0x2cd   :  { %1576 = vmatpush3.bf16.msra.mxu0 %v1575_v33 }
 0x2ce   :  { %1577 = vmatprep.subr.bf16.mxu0 %v1711_v0 }
 0x2d1   :  { %1579 = vmatpush3.bf16.msra.mxu0 %v1578_v36 }
 0x2d2   :  { %1604 = vmatprep.subr.bf16.mxu0 %v1711_v0 }
 0x2d4   :  { %v1999_v46 = vpop.eup %1701 }
 0x2d5   :  { %1371 = vmatmul.mubr.f32.vlgmr.msra.gmra.mrb[4].mxu0 %v1999_v46 }
 0x2d6   :  { %1606 = vmatpush3.bf16.msra.mxu0 %v1925_v14  ;;  %1440 = vmatprep.mubr.msk.f32.mxu0 %vm1712_vm0, %v1713_v3  ;;  %v759_v14 = vld [vmem:[%s2233_s3 + $0x38] sm:$0xff] }
 0x2d7   :  { %1607 = vmatprep.subr.bf16.mxu0 %v1711_v0 }
 0x2da   :  { %1609 = vmatpush3.bf16.msra.mxu0 %v1935_v17  ;;  %v1642_v17 = vpack.c.bf16 %v759_v14, %v758_v13 }
 0x2db   :  { %1610 = vmatprep.subr.bf16.mxu0 %v1711_v0 }
 0x2de   :  { %1612 = vmatpush3.bf16.msra.mxu0 %v1563_v21  ;;  %v761_v21 = vld [vmem:[%s2233_s3 + $0x48] sm:$0xff] }
 0x2df   :  { %1613 = vmatprep.subr.bf16.mxu0 %v1711_v0 }
 0x2e2   :  { %1615 = vmatpush3.bf16.msra.mxu0 %v1566_v24  ;;  %v1646_v24 = vpack.c.bf16 %v761_v21, %v760_v20  ;;  %v810_v20 = vld [vmem:[%s2233_s3 + $0x1d0] sm:$0xff]  ;;  %v811_v21 = vld [vmem:[%s2233_s3 + $0x1d8] sm:$0xff] }
 0x2e3   :  { %1616 = vmatprep.subr.bf16.mxu0 %v1711_v0  ;;  %v1680_v22 = vpack.c.bf16 %v811_v21, %v810_v20 }
 0x2e6   :  { %1618 = vmatpush3.bf16.msra.mxu0 %v1569_v27  ;;  %v763_v27 = vld [vmem:[%s2233_s3 + $0x58] sm:$0xff] }
 0x2e7   :  { %1619 = vmatprep.subr.bf16.mxu0 %v1711_v0 }
 0x2ea   :  { %1621 = vmatpush3.bf16.msra.mxu0 %v1572_v30  ;;  %v1650_v30 = vpack.c.bf16 %v763_v27, %v762_v26  ;;  %v812_v26 = vld [vmem:[%s2233_s3 + $0x1e0] sm:$0xff]  ;;  %v813_v27 = vld [vmem:[%s2233_s3 + $0x1e8] sm:$0xff] }
 0x2eb   :  { %1622 = vmatprep.subr.bf16.mxu0 %v1711_v0  ;;  %v1684_v29 = vpack.c.bf16 %v813_v27, %v812_v26 }
 0x2ee   :  { %1624 = vmatpush3.bf16.msra.mxu0 %v1575_v33  ;;  %v765_v33 = vld [vmem:[%s2233_s3 + $0x68] sm:$0xff] }
 0x2ef   :  { %1625 = vmatprep.subr.bf16.mxu0 %v1711_v0  ;;  %v506_v0 = vadd.f32 %v1334_v42, %v1992_v41  ;;  %v800_v42 = vld [vmem:[%s2233_s3 + $0x180] sm:$0xff] }
 0x2f0   :  { %v1660_v45 = vpack.c.bf16 %v801_v43, %v800_v42 }
 0x2f2   :  { %1627 = vmatpush3.bf16.msra.mxu0 %v1578_v36  ;;  %v1654_v36 = vpack.c.bf16 %v765_v33, %v764_v32  ;;  %v815_v32 = vld [vmem:[%s2233_s3 + $0x1f8] sm:$0xff] }
 0x2f3   :  { %1661 = vmatprep.subr.bf16.mxu0 %v1660_v45  ;;  %v976_v45 = vld [vmem:[%s2233_s3 + $0x200] ss:$0 sm:$0xff] }
 0x387   :  { %v407_v50 = vpop.f32.mrb[2].mxu0 }
 0x388   :  { %v411_v51 = vadd.f32 %v407_v50, %v1854_v44  ;;  %v1299_v52 = vpop.f32.mrb[3].mxu0  ;;  %v753_v44 = vld [vmem:[%s2233_s3 + $0x8] sm:$0xff] }
 0x389   :  { %v1630_v60 = vpack.c.bf16 %v753_v44, %v752_v57  ;;  %v786_v57 = vld [vmem:[%s2233_s3 + $0x110] sm:$0xff]  ;;  %v787_v44 = vld [vmem:[%s2233_s3 + $0x118] sm:$0xff] }
 0x38a   :  { %1703 = vtanh.f32 %v411_v51 }
 0x394   :  { %v1704_v53 = vpop.eup %1703 }
 0x395   :  { %1336 = vmatmul.mubr.f32.gmra.mrb[8].mxu1 %v1704_v53  ;;  %v785_v53 = vld [vmem:[%s2233_s3 + $0x108] sm:$0xff] }
 0x396   :  { %1405 = vmatprep.mubr.msk.f32.mxu1 %vm1712_vm0, %v1713_v3 }
 0x3a8   :  { %v602_v54 = vpop.f32.mrb[4].mxu0 }
 0x3a9   :  { %v606_v55 = vadd.f32 %v602_v54, %v506_v0  ;;  %v1372_v56 = vpop.f32.mrb[5].mxu0  ;;  %v802_v0 = vld [vmem:[%s2233_s3 + $0x190] sm:$0xff]  ;;  %v803_v54 = vld [vmem:[%s2233_s3 + $0x198] sm:$0xff] }
 0x3aa   :  { %v1664_v56 = vpack.c.bf16 %v803_v54, %v802_v0 }
 0x3ab   :  { %1705 = vtanh.f32 %v606_v55 }
 0x3b5   :  { %v1706_v1 = vpop.eup %1705 }
 0x3b6   :  { %1406 = vmatmul.mubr.f32.vlgmr.msra.gmra.mrb[10].mxu1 %v1706_v1 }
 0x3b7   :  { %1631 = vmatpush3.bf16.msra.mxu1 %v1630_v60  ;;  %885 = vmatprep.mubr.f32.mxu1 %v1706_v1  ;;  %v805_v60 = vld [vmem:[%s2233_s3 + $0x1a8] sm:$0xff] }
 0x3b8   :  { %1633 = vmatprep.subr.bf16.mxu1 %v1632_v61  ;;  %v1666_v61 = vpack.c.bf16 %v787_v44, %v786_v57  ;;  %v1668_v62 = vpack.c.bf16 %v805_v60, %v804_v59  ;;  %v789_v1 = vld [vmem:[%s2233_s3 + $0x128] sm:$0xff] }
 0x3bb   :  { %1635 = vmatpush3.bf16.msra.mxu1 %v1634_v5  ;;  %v1670_v5 = vpack.c.bf16 %v789_v1, %v788_v63 }
 0x3bc   :  { %1637 = vmatprep.subr.bf16.mxu1 %v1636_v6  ;;  %v1672_v6 = vpack.c.bf16 %v807_v4, %v806_v2 }
 0x3bf   :  { %1639 = vmatpush3.bf16.msra.mxu1 %v1638_v11  ;;  %v1674_v11 = vpack.c.bf16 %v791_v8, %v790_v7 }
 0x3c0   :  { %1641 = vmatprep.subr.bf16.mxu1 %v1640_v12  ;;  %v1676_v12 = vpack.c.bf16 %v809_v10, %v808_v9 }
 0x3c3   :  { %1643 = vmatpush3.bf16.msra.mxu1 %v1642_v17  ;;  %v793_v17 = vld [vmem:[%s2233_s3 + $0x148] sm:$0xff] }
 0x3c4   :  { %1645 = vmatprep.subr.bf16.mxu1 %v1644_v19  ;;  %v1678_v19 = vpack.c.bf16 %v793_v17, %v792_v16 }
 0x3c7   :  { %1647 = vmatpush3.bf16.msra.mxu1 %v1646_v24  ;;  %v795_v24 = vld [vmem:[%s2233_s3 + $0x158] sm:$0xff] }
 0x3c8   :  { %1649 = vmatprep.subr.bf16.mxu1 %v1648_v25  ;;  %v1682_v25 = vpack.c.bf16 %v795_v24, %v794_v23 }
 0x3cb   :  { %1651 = vmatpush3.bf16.msra.mxu1 %v1650_v30  ;;  %v797_v30 = vld [vmem:[%s2233_s3 + $0x168] sm:$0xff] }
 0x3cc   :  { %1653 = vmatprep.subr.bf16.mxu1 %v1652_v31  ;;  %v814_v31 = vld [vmem:[%s2233_s3 + $0x1f0] sm:$0xff]  ;;  %v1686_v33 = vpack.c.bf16 %v797_v30, %v796_v28 }
 0x3cd   :  { %v1688_v34 = vpack.c.bf16 %v815_v32, %v814_v31 }
 0x3cf   :  { %1655 = vmatpush3.bf16.msra.mxu1 %v1654_v36  ;;  %v799_v36 = vld [vmem:[%s2233_s3 + $0x178] sm:$0xff] }
 0x3d0   :  { %1657 = vmatprep.subr.bf16.mxu1 %v1656_v37  ;;  %v1690_v37 = vpack.c.bf16 %v799_v36, %v798_v35 }
 0x3d3   :  { %1659 = vmatpush3.bf16.msra.mxu1 %v1658_v40 }
 0x3d6   :  { %886 = vmatmul.mubr.f32.vlgmr.msra.gmra.mrb[12].mxu1 %v1999_v46  ;;  %v784_v46 = vld [vmem:[%s2233_s3 + $0x100] sm:$0xff] }
 0x3d7   :  { %v1662_v55 = vpack.c.bf16 %v785_v53, %v784_v46 }
 0x468   :  { %v2120_v47 = vpop.f32.mrb[8].mxu1 }
 0x469   :  { %v510_v48 = vpop.f32.mrb[9].mxu1  ;;  %v516_v38 = vadd.f32 %v2120_v47, %v1992_v41 }
 0x46a   :  { %v511_v49 = vadd.f32 %v1992_v41, %v510_v48 }
 0x489   :  { %v674_v50 = vpop.f32.mrb[10].mxu1 }
 0x48a   :  { %v678_v51 = vadd.f32 %v674_v50, %v511_v49  ;;  %v1407_v52 = vpop.f32.mrb[11].mxu1  ;;  %v963_v49 = vsel %vm962_vm3, -1.0, %v1713_v3 }
 0x48c   :  { %1707 = vtanh.f32 %v678_v51  ;;  %v964_v51 = vsel %vm961_vm4, 1.0, %v963_v49 }
 0x496   :  { %v2141_v58 = vpop.eup %1707 }
 0x497   :  { %1441 = vmatmul.mubr.f32.vlgmr.msra.gmra.mrb[6].mxu0 %v2141_v58 }
 0x498   :  { %1663 = vmatpush3.bf16.msra.mxu0 %v1662_v55 }
 0x499   :  { %1665 = vmatprep.subr.bf16.mxu0 %v1664_v56 }
 0x49c   :  { %1667 = vmatpush3.bf16.msra.mxu0 %v1666_v61 }
 0x49d   :  { %1669 = vmatprep.subr.bf16.mxu0 %v1668_v62 }
 0x4a0   :  { %1671 = vmatpush3.bf16.msra.mxu0 %v1670_v5 }
 0x4a1   :  { %1673 = vmatprep.subr.bf16.mxu0 %v1672_v6 }
 0x4a4   :  { %1675 = vmatpush3.bf16.msra.mxu0 %v1674_v11 }
 0x4a5   :  { %1677 = vmatprep.subr.bf16.mxu0 %v1676_v12 }
 0x4a8   :  { %1679 = vmatpush3.bf16.msra.mxu0 %v1678_v19 }
 0x4a9   :  { %v1139_v13 = vpop.f32.mrb[12].mxu1  ;;  %1681 = vmatprep.subr.bf16.mxu0 %v1680_v22 }
 0x4aa   :  { %v1140_v14 = vpop.f32.mrb[13].mxu1 }
 0x4ab   :  { %v1141_v15 = vadd.f32 %v1140_v14, %v1139_v13 }
 0x4ac   :  { %1683 = vmatpush3.bf16.msra.mxu0 %v1682_v25 }
 0x4ad   :  { %1685 = vmatprep.subr.bf16.mxu0 %v1684_v29  ;;  %v888_v47 = vadd.f32 %v1141_v15, %v976_v45 }
 0x4b0   :  { %1687 = vmatpush3.bf16.msra.mxu0 %v1686_v33 }
 0x4b1   :  { %1689 = vmatprep.subr.bf16.mxu0 %v1688_v34 }
 0x4b4   :  { %1691 = vmatpush3.bf16.msra.mxu0 %v1690_v37 }
 0x56a   :  { %v746_v39 = vpop.f32.mrb[6].mxu0 }
 0x56b   :  { %v750_v40 = vadd.f32 %v746_v39, %v516_v38  ;;  %v1442_v42 = vpop.f32.mrb[7].mxu0 }
 0x56d   :  { %1709 = vtanh.f32 %v750_v40 }
 0x577   :  { %v1710_v43 = vpop.eup %1709 }
 0x578   :  { %955 = vmatprep.mubr.f32.mxu0 %v1710_v43 }
 0x579   :  { %956 = vmatmul.mubr.f32.vlgmr.msra.gmra.mrb[8].mxu0 %v2141_v58 }
 0x64c   :  { %v1174_v48 = vpop.f32.mrb[8].mxu0 }
 0x64d   :  { %v1175_v41 = vpop.f32.mrb[9].mxu0 }
 0x64e   :  { %v1176_v50 = vadd.f32 %v1175_v41, %v1174_v48 }
 0x650   :  { %v958_v52 = vadd.f32 %v1176_v50, %v888_v47 }
 0x652   :  { %v965_v46 = vmul.f32 %v964_v51, %v958_v52 }
 0x654   :  { %v966_v53 = vsub.f32 %v1789_v18, %v965_v46 }
 0x656   :  { %967 = vst.msk [vmem:[%s2234_s4] sm:$0xff] %vm100_vm2, %v966_v53 }

</bundles_post_ra>
